<compile_context>
chip_gen: v7x
topology: tpu7x:2x2x1
jax: 0.10.0
libtpu: 0.0.40
codegen_flags: <defaults>
</compile_context>

<pallas_src>
import functools

import jax
import jax.numpy as jnp
from jax.experimental import pallas as pl
from jax.experimental.pallas import tpu as pltpu


def attention_merger_kernel(x_ref, r_ref, gd_ref,
                            wq_ref, bq_ref, wk_ref, bk_ref,
                            wv_ref, bv_ref, wd_ref, bd_ref,
                            out_ref, *, tau):
    TB, S, H = r_ref.shape
    nh = gd_ref.shape[-1]
    hd = H // nh
    f32 = jnp.float32

    x = x_ref[...]                        # (TB, H)     bf16 query rows
    r = r_ref[...].reshape(TB * S, H)     # (TB*S, H)   bf16 retrieval rows (stacked)
    gd = gd_ref[...]                      # (TB, S, nh) f32  gumbel(g0) - gumbel(g1)

    # Head-membership one-hot matrices, built in-kernel (cheap VPU work, no DMA).
    d_col = jax.lax.broadcasted_iota(jnp.int32, (H, nh), 0)
    h_col = jax.lax.broadcasted_iota(jnp.int32, (H, nh), 1) * hd
    mh = jnp.where((d_col >= h_col) & (d_col < h_col + hd), 1.0, 0.0)    # (H, nh)
    d_row = jax.lax.broadcasted_iota(jnp.int32, (nh, H), 1)
    h_row = jax.lax.broadcasted_iota(jnp.int32, (nh, H), 0) * hd
    mht = jnp.where((d_row >= h_row) & (d_row < h_row + hd), 1.0, 0.0)   # (nh, H)

    # Projections: bf16 operands on the MXU, f32 accumulation.
    q = jnp.dot(x, wq_ref[...], preferred_element_type=f32) + bq_ref[...]   # (TB, H)
    k = jnp.dot(r, wk_ref[...], preferred_element_type=f32) + bk_ref[...]   # (TB*S, H)
    v = jnp.dot(r, wv_ref[...], preferred_element_type=f32) + bv_ref[...]   # (TB*S, H)

    # Per-head inverse L2 norms (normalize the scores, not q/k elementwise).
    q_inv = jax.lax.rsqrt(jnp.dot(q * q, mh, preferred_element_type=f32) + 1e-12)  # (TB, nh)
    k_inv = jax.lax.rsqrt(jnp.dot(k * k, mh, preferred_element_type=f32) + 1e-12)  # (TB*S, nh)

    # Per-head raw dot products -> cosine scores.
    k3 = k.reshape(TB, S, H)
    qk = q.reshape(TB, 1, H) * k3                                            # (TB, S, H)
    raw = jnp.dot(qk.reshape(TB * S, H), mh, preferred_element_type=f32)     # (TB*S, nh)
    scores = (raw.reshape(TB, S, nh)
              * k_inv.reshape(TB, S, nh)
              * q_inv.reshape(TB, 1, nh))                                    # (TB, S, nh)

    # 2-class gumbel-softmax (soft), component 0:
    #   sigmoid((log(p+eps) - log(1-p+eps) + g0 - g1) / tau)
    p = jnp.clip((scores + 1.0) * 0.5, 0.0, 1.0)   # clamp: fp error can push |cos|>1
    eps = 1e-20
    logit_diff = jnp.log(p + eps) - jnp.log(1.0 - p + eps)
    z = (logit_diff + gd) * (1.0 / tau)
    probs = pl.reciprocal(1.0 + jnp.exp(-z), approx=True)                    # (TB, S, nh)

    # context[b, d] = sum_s probs[b, s, head(d)] * v[b, s, d]
    pexp = jnp.dot(probs.reshape(TB * S, nh), mht, preferred_element_type=f32)  # (TB*S, H)
    ctx = jnp.sum(pexp.reshape(TB, S, H) * v.reshape(TB, S, H), axis=1)      # (TB, H)

    out = (jnp.dot(ctx.astype(wd_ref.dtype), wd_ref[...], preferred_element_type=f32)
           + bd_ref[...])                                                    # (TB, H) f32
    out_ref[...] = out


def _pick_batch_tile(B, S, H, budget_bytes=16 * 1024 * 1024):
    """Pick a batch tile that keeps the per-step working set comfortably in VMEM."""
    weight_bytes = 4 * H * H * 2 * 2                     # four bf16 (H,H) weights, 2x buffered
    row_bytes = S * H * (2 * 2 + 4 * 6) + 64 * H         # streamed tiles + f32 temporaries
    avail = max(budget_bytes - weight_bytes, row_bytes)
    tb = max(1, avail // row_bytes)
    if tb >= B:
        return B                                          # whole batch in one step
    return max(8, (int(tb) // 8) * 8)                     # multiple of 8 -> clean sublane tiling


def attention_based_merger(input_tensor, retrieval_tensor, params, gumbel,
                           n_head, tau=1.0, batch_tile=None):
    """input_tensor: (B, 1, H); retrieval_tensor: (B, S, H); gumbel: (B, S, n_head, 2)."""
    wq, bq, wk, bk, wv, bv, wd, bd = params
    B, Sq, H = input_tensor.shape
    assert Sq == 1, "forward requires query length 1 (view to (B, 1, all_head_size))"
    _, S, _ = retrieval_tensor.shape
    nh = n_head

    TB = batch_tile if batch_tile is not None else _pick_batch_tile(B, S, H)
    nb = -(-B // TB)          # ceil div
    Bp = nb * TB

    # Activations that feed the MXU in bf16; gate noise and biases stay f32.
    x = input_tensor[:, 0, :].astype(jnp.bfloat16)                       # (B, H)
    r = retrieval_tensor.astype(jnp.bfloat16)                            # (B, S, H)
    gd = (gumbel[..., 0] - gumbel[..., 1]).astype(jnp.float32)           # (B, S, nh)

    if Bp != B:
        pad = Bp - B
        x = jnp.pad(x, ((0, pad), (0, 0)))
        r = jnp.pad(r, ((0, pad), (0, 0), (0, 0)))
        gd = jnp.pad(gd, ((0, pad), (0, 0), (0, 0)))

    wq_b, wk_b, wv_b, wd_b = (w.astype(jnp.bfloat16) for w in (wq, wk, wv, wd))
    bq2, bk2, bv2, bd2 = (b.reshape(1, H).astype(jnp.float32) for b in (bq, bk, bv, bd))

    wspec = pl.BlockSpec((H, H), lambda b: (0, 0))
    bspec = pl.BlockSpec((1, H), lambda b: (0, 0))

    out = pl.pallas_call(
        functools.partial(attention_merger_kernel, tau=tau),
        out_shape=jax.ShapeDtypeStruct((Bp, H), jnp.float32),
        grid=(nb,),
        in_specs=[
            pl.BlockSpec((TB, H), lambda b: (b, 0)),        # query rows
            pl.BlockSpec((TB, S, H), lambda b: (b, 0, 0)),  # retrieval rows
            pl.BlockSpec((TB, S, nh), lambda b: (b, 0, 0)), # gumbel noise diff
            wspec, bspec,   # Wq, bq
            wspec, bspec,   # Wk, bk
            wspec, bspec,   # Wv, bv
            wspec, bspec,   # Wd, bd
        ],
        out_specs=pl.BlockSpec((TB, H), lambda b: (b, 0)),
        compiler_params=pltpu.CompilerParams(
            dimension_semantics=("parallel",),
            vmem_limit_bytes=32 * 1024 * 1024,
        ),
    )(x, r, gd, wq_b, bq2, wk_b, bk2, wv_b, bv2, wd_b, bd2)

    return out[:B]   # (B, H)


def init_params(key, hidden_size):
    """Deterministic synthetic weights.  Linears stored as (in, out)."""
    ks = jax.random.split(key, 8)

    def lin(kw, kb):
        w = jax.random.normal(kw, (hidden_size, hidden_size), jnp.float32) * 0.05
        b = jax.random.normal(kb, (hidden_size,), jnp.float32) * 0.05
        return w, b

    wq, bq = lin(ks[0], ks[1])
    wk, bk = lin(ks[2], ks[3])
    wv, bv = lin(ks[4], ks[5])
    wd, bd = lin(ks[6], ks[7])
    return (wq, bq, wk, bk, wv, bv, wd, bd)


def reference_forward(x, r, params, gumbel, n_head, tau=1.0):
    """Pure-JAX mirror of the PyTorch forward (same gumbel noise layout as kernel)."""
    wq, bq, wk, bk, wv, bv, wd, bd = params
    B, _, H = x.shape
    _, S, _ = r.shape
    nh, hd = n_head, H // n_head
    hp = jax.lax.Precision.HIGHEST

    q = jnp.einsum('bqh,ho->bqo', x, wq, precision=hp) + bq          # (B, 1, H)
    k = jnp.einsum('bsh,ho->bso', r, wk, precision=hp) + bk          # (B, S, H)
    v = jnp.einsum('bsh,ho->bso', r, wv, precision=hp) + bv          # (B, S, H)

    qh = q.reshape(B, 1, nh, hd).transpose(0, 2, 1, 3)               # (B, nh, 1, hd)
    kh = k.reshape(B, S, nh, hd).transpose(0, 2, 3, 1)               # (B, nh, hd, S)
    vh = v.reshape(B, S, nh, hd).transpose(0, 2, 3, 1)               # (B, nh, hd, S)

    qn = qh / jnp.linalg.norm(qh, axis=-1, keepdims=True)
    kn = kh / jnp.linalg.norm(kh, axis=-2, keepdims=True)
    scores = jnp.einsum('bhqd,bhds->bhqs', qn, kn, precision=hp)     # (B, nh, 1, S)

    p = (scores + 1.0) / 2.0
    ld = jnp.log(p + 1e-20) - jnp.log(1.0 - p + 1e-20)
    gdiff = jnp.transpose(gumbel[..., 0] - gumbel[..., 1], (0, 2, 1))[:, :, None, :]
    probs = jax.nn.sigmoid((ld + gdiff) / tau)                       # (B, nh, 1, S)

    ctx = jnp.einsum('bhqs,bhds->bhqd', probs, vh, precision=hp)     # (B, nh, 1, hd)
    ctx = ctx.transpose(0, 2, 1, 3).reshape(B, H)
    return jnp.einsum('bh,ho->bo', ctx, wd, precision=hp) + bd       # (B, H)


if __name__ == "__main__":
    B, S, H, n_head = 2, 8, 32, 4

    key = jax.random.PRNGKey(0)
    k_x, k_r, k_g, k_p = jax.random.split(key, 4)
    input_tensor = jax.random.normal(k_x, (B, 1, H), jnp.float32)
    retrieval_tensor = jax.random.normal(k_r, (B, S, H), jnp.float32)
    # i.i.d. Gumbel(0,1) noise for the 2-class gumbel-softmax gate (deterministic).
    gumbel = jax.random.gumbel(k_g, (B, S, n_head, 2), jnp.float32)
    params = init_params(k_p, H)

    out = attention_based_merger(input_tensor, retrieval_tensor, params, gumbel, n_head)
    out = jax.block_until_ready(out)

    ref = reference_forward(input_tensor, retrieval_tensor, params, gumbel, n_head)
    # Tolerance loosened slightly vs the all-f32 HIGHEST-precision reference because the
    # kernel feeds the MXU with bf16 weights/activations (f32 accumulation).
    if not jnp.allclose(out, ref, atol=3e-2, rtol=3e-2):
        raise AssertionError("Pallas kernel output mismatch vs JAX reference")

    print("KERNEL_OK")
</pallas_src>

<mosaic_0001>
module attributes {stable_mosaic.version = 11 : i64} {
  func.func @attention_merger_kernel(%arg0: i32, %arg1: memref<2x32xbf16, #tpu.memory_space<vmem>>, %arg2: memref<2x8x32xbf16, #tpu.memory_space<vmem>>, %arg3: memref<2x8x4xf32, #tpu.memory_space<vmem>>, %arg4: memref<32x32xbf16, #tpu.memory_space<vmem>>, %arg5: memref<1x32xf32, #tpu.memory_space<vmem>>, %arg6: memref<32x32xbf16, #tpu.memory_space<vmem>>, %arg7: memref<1x32xf32, #tpu.memory_space<vmem>>, %arg8: memref<32x32xbf16, #tpu.memory_space<vmem>>, %arg9: memref<1x32xf32, #tpu.memory_space<vmem>>, %arg10: memref<32x32xbf16, #tpu.memory_space<vmem>>, %arg11: memref<1x32xf32, #tpu.memory_space<vmem>>, %arg12: memref<2x32xf32, #tpu.memory_space<vmem>>) attributes {dimension_semantics = [#tpu.dimension_semantics<parallel>], iteration_bounds = array<i64: 1>, scalar_prefetch = 0 : i64, scratch_operands = 0 : i64, tpu.core_type = #tpu.core_type<tc>, window_params = [{transform_indices = @transform_0, window_bounds = array<i64: 2, 32>}, {transform_indices = @transform_1, window_bounds = array<i64: 2, 8, 32>}, {transform_indices = @transform_2, window_bounds = array<i64: 2, 8, 4>}, {pipeline_mode = #tpu.pipeline_mode<synchronous>, transform_indices = @transform_3, window_bounds = array<i64: 32, 32>}, {pipeline_mode = #tpu.pipeline_mode<synchronous>, transform_indices = @transform_4, window_bounds = array<i64: 1, 32>}, {pipeline_mode = #tpu.pipeline_mode<synchronous>, transform_indices = @transform_5, window_bounds = array<i64: 32, 32>}, {pipeline_mode = #tpu.pipeline_mode<synchronous>, transform_indices = @transform_6, window_bounds = array<i64: 1, 32>}, {pipeline_mode = #tpu.pipeline_mode<synchronous>, transform_indices = @transform_7, window_bounds = array<i64: 32, 32>}, {pipeline_mode = #tpu.pipeline_mode<synchronous>, transform_indices = @transform_8, window_bounds = array<i64: 1, 32>}, {pipeline_mode = #tpu.pipeline_mode<synchronous>, transform_indices = @transform_9, window_bounds = array<i64: 32, 32>}, {pipeline_mode = #tpu.pipeline_mode<synchronous>, transform_indices = @transform_10, window_bounds = array<i64: 1, 32>}, {transform_indices = @transform_11, window_bounds = array<i64: 2, 32>}]} {
    %c0 = arith.constant 0 : index
    %c0_0 = arith.constant 0 : index
    %0 = vector.load %arg1[%c0, %c0_0] : memref<2x32xbf16, #tpu.memory_space<vmem>>, vector<2x32xbf16>
    %c0_1 = arith.constant 0 : index
    %c0_2 = arith.constant 0 : index
    %c0_3 = arith.constant 0 : index
    %1 = vector.load %arg2[%c0_1, %c0_2, %c0_3] : memref<2x8x32xbf16, #tpu.memory_space<vmem>>, vector<2x8x32xbf16>
    %2 = vector.shape_cast %1 : vector<2x8x32xbf16> to vector<16x32xbf16>
    %c0_4 = arith.constant 0 : index
    %c0_5 = arith.constant 0 : index
    %c0_6 = arith.constant 0 : index
    %3 = vector.load %arg3[%c0_4, %c0_5, %c0_6] : memref<2x8x4xf32, #tpu.memory_space<vmem>>, vector<2x8x4xf32>
    %4 = tpu.iota {dimensions = array<i32: 0>} : vector<32x4xi32>
    %5 = tpu.iota {dimensions = array<i32: 1>} : vector<32x4xi32>
    %c8_i32 = arith.constant 8 : i32
    %6 = vector.broadcast %c8_i32 : i32 to vector<32x4xi32>
    %7 = arith.muli %5, %6 : vector<32x4xi32>
    %8 = arith.cmpi sge, %4, %7 : vector<32x4xi32>
    %c8_i32_7 = arith.constant 8 : i32
    %9 = vector.broadcast %c8_i32_7 : i32 to vector<32x4xi32>
    %10 = arith.addi %7, %9 : vector<32x4xi32>
    %11 = arith.cmpi slt, %4, %10 : vector<32x4xi32>
    %12 = arith.andi %8, %11 : vector<32x4xi1>
    %cst = arith.constant 1.000000e+00 : f32
    %cst_8 = arith.constant 0.000000e+00 : f32
    %13 = vector.broadcast %cst : f32 to vector<32x4xf32>
    %14 = vector.broadcast %cst_8 : f32 to vector<32x4xf32>
    %15 = arith.select %12, %13, %14 : vector<32x4xi1>, vector<32x4xf32>
    %16 = tpu.iota {dimensions = array<i32: 1>} : vector<4x32xi32>
    %17 = tpu.iota {dimensions = array<i32: 0>} : vector<4x32xi32>
    %c8_i32_9 = arith.constant 8 : i32
    %18 = vector.broadcast %c8_i32_9 : i32 to vector<4x32xi32>
    %19 = arith.muli %17, %18 : vector<4x32xi32>
    %20 = arith.cmpi sge, %16, %19 : vector<4x32xi32>
    %c8_i32_10 = arith.constant 8 : i32
    %21 = vector.broadcast %c8_i32_10 : i32 to vector<4x32xi32>
    %22 = arith.addi %19, %21 : vector<4x32xi32>
    %23 = arith.cmpi slt, %16, %22 : vector<4x32xi32>
    %24 = arith.andi %20, %23 : vector<4x32xi1>
    %cst_11 = arith.constant 1.000000e+00 : f32
    %cst_12 = arith.constant 0.000000e+00 : f32
    %25 = vector.broadcast %cst_11 : f32 to vector<4x32xf32>
    %26 = vector.broadcast %cst_12 : f32 to vector<4x32xf32>
    %27 = arith.select %24, %25, %26 : vector<4x32xi1>, vector<4x32xf32>
    %c0_13 = arith.constant 0 : index
    %c0_14 = arith.constant 0 : index
    %28 = vector.load %arg4[%c0_13, %c0_14] : memref<32x32xbf16, #tpu.memory_space<vmem>>, vector<32x32xbf16>
    %cst_15 = arith.constant dense<0.000000e+00> : vector<2x32xf32>
    %29 = tpu.matmul %0, %28, %cst_15 {dimension_numbers = #tpu.dot_dimension_numbers<[1], [0], [0], [1], [0, 0, 1, 1], [], []>} : vector<2x32xbf16>, vector<32x32xbf16>, vector<2x32xf32> -> vector<2x32xf32>
    %c0_16 = arith.constant 0 : index
    %c0_17 = arith.constant 0 : index
    %30 = vector.load %arg5[%c0_16, %c0_17] : memref<1x32xf32, #tpu.memory_space<vmem>>, vector<1x32xf32>
    %31 = vector.broadcast %30 : vector<1x32xf32> to vector<2x32xf32>
    %32 = arith.addf %29, %31 : vector<2x32xf32>
    %c0_18 = arith.constant 0 : index
    %c0_19 = arith.constant 0 : index
    %33 = vector.load %arg6[%c0_18, %c0_19] : memref<32x32xbf16, #tpu.memory_space<vmem>>, vector<32x32xbf16>
    %cst_20 = arith.constant dense<0.000000e+00> : vector<16x32xf32>
    %34 = tpu.matmul %2, %33, %cst_20 {dimension_numbers = #tpu.dot_dimension_numbers<[1], [0], [0], [1], [0, 0, 1, 1], [], []>} : vector<16x32xbf16>, vector<32x32xbf16>, vector<16x32xf32> -> vector<16x32xf32>
    %c0_21 = arith.constant 0 : index
    %c0_22 = arith.constant 0 : index
    %35 = vector.load %arg7[%c0_21, %c0_22] : memref<1x32xf32, #tpu.memory_space<vmem>>, vector<1x32xf32>
    %36 = vector.broadcast %35 : vector<1x32xf32> to vector<16x32xf32>
    %37 = arith.addf %34, %36 : vector<16x32xf32>
    %c0_23 = arith.constant 0 : index
    %c0_24 = arith.constant 0 : index
    %38 = vector.load %arg8[%c0_23, %c0_24] : memref<32x32xbf16, #tpu.memory_space<vmem>>, vector<32x32xbf16>
    %cst_25 = arith.constant dense<0.000000e+00> : vector<16x32xf32>
    %39 = tpu.matmul %2, %38, %cst_25 {dimension_numbers = #tpu.dot_dimension_numbers<[1], [0], [0], [1], [0, 0, 1, 1], [], []>} : vector<16x32xbf16>, vector<32x32xbf16>, vector<16x32xf32> -> vector<16x32xf32>
    %c0_26 = arith.constant 0 : index
    %c0_27 = arith.constant 0 : index
    %40 = vector.load %arg9[%c0_26, %c0_27] : memref<1x32xf32, #tpu.memory_space<vmem>>, vector<1x32xf32>
    %41 = vector.broadcast %40 : vector<1x32xf32> to vector<16x32xf32>
    %42 = arith.addf %39, %41 : vector<16x32xf32>
    %43 = arith.mulf %32, %32 : vector<2x32xf32>
    %cst_28 = arith.constant dense<0.000000e+00> : vector<2x4xf32>
    %44 = tpu.matmul %43, %15, %cst_28 {dimension_numbers = #tpu.dot_dimension_numbers<[1], [0], [0], [1], [0, 0, 1, 1], [], []>} : vector<2x32xf32>, vector<32x4xf32>, vector<2x4xf32> -> vector<2x4xf32>
    %cst_29 = arith.constant 9.99999996E-13 : f32
    %45 = vector.broadcast %cst_29 : f32 to vector<2x4xf32>
    %46 = arith.addf %44, %45 : vector<2x4xf32>
    %47 = math.rsqrt %46 : vector<2x4xf32>
    %48 = arith.mulf %37, %37 : vector<16x32xf32>
    %cst_30 = arith.constant dense<0.000000e+00> : vector<16x4xf32>
    %49 = tpu.matmul %48, %15, %cst_30 {dimension_numbers = #tpu.dot_dimension_numbers<[1], [0], [0], [1], [0, 0, 1, 1], [], []>} : vector<16x32xf32>, vector<32x4xf32>, vector<16x4xf32> -> vector<16x4xf32>
    %cst_31 = arith.constant 9.99999996E-13 : f32
    %50 = vector.broadcast %cst_31 : f32 to vector<16x4xf32>
    %51 = arith.addf %49, %50 : vector<16x4xf32>
    %52 = math.rsqrt %51 : vector<16x4xf32>
    %53 = vector.shape_cast %37 : vector<16x32xf32> to vector<2x8x32xf32>
    %54 = vector.shape_cast %32 : vector<2x32xf32> to vector<2x1x32xf32>
    %55 = vector.broadcast %54 : vector<2x1x32xf32> to vector<2x8x32xf32>
    %56 = arith.mulf %55, %53 : vector<2x8x32xf32>
    %57 = vector.shape_cast %56 : vector<2x8x32xf32> to vector<16x32xf32>
    %cst_32 = arith.constant dense<0.000000e+00> : vector<16x4xf32>
    %58 = tpu.matmul %57, %15, %cst_32 {dimension_numbers = #tpu.dot_dimension_numbers<[1], [0], [0], [1], [0, 0, 1, 1], [], []>} : vector<16x32xf32>, vector<32x4xf32>, vector<16x4xf32> -> vector<16x4xf32>
    %59 = vector.shape_cast %58 : vector<16x4xf32> to vector<2x8x4xf32>
    %60 = vector.shape_cast %52 : vector<16x4xf32> to vector<2x8x4xf32>
    %61 = arith.mulf %59, %60 : vector<2x8x4xf32>
    %62 = vector.shape_cast %47 : vector<2x4xf32> to vector<2x1x4xf32>
    %63 = vector.broadcast %62 : vector<2x1x4xf32> to vector<2x8x4xf32>
    %64 = arith.mulf %61, %63 : vector<2x8x4xf32>
    %cst_33 = arith.constant 1.000000e+00 : f32
    %65 = vector.broadcast %cst_33 : f32 to vector<2x8x4xf32>
    %66 = arith.addf %64, %65 : vector<2x8x4xf32>
    %cst_34 = arith.constant 5.000000e-01 : f32
    %67 = vector.broadcast %cst_34 : f32 to vector<2x8x4xf32>
    %68 = arith.mulf %66, %67 : vector<2x8x4xf32>
    %cst_35 = arith.constant 0.000000e+00 : f32
    %cst_36 = arith.constant 1.000000e+00 : f32
    %69 = vector.broadcast %cst_35 : f32 to vector<2x8x4xf32>
    %70 = arith.maximumf %69, %68 : vector<2x8x4xf32>
    %71 = vector.broadcast %cst_36 : f32 to vector<2x8x4xf32>
    %72 = arith.minimumf %71, %70 : vector<2x8x4xf32>
    %cst_37 = arith.constant 9.99999968E-21 : f32
    %73 = vector.broadcast %cst_37 : f32 to vector<2x8x4xf32>
    %74 = arith.addf %72, %73 : vector<2x8x4xf32>
    %75 = math.log %74 : vector<2x8x4xf32>
    %cst_38 = arith.constant 1.000000e+00 : f32
    %76 = vector.broadcast %cst_38 : f32 to vector<2x8x4xf32>
    %77 = arith.subf %76, %72 : vector<2x8x4xf32>
    %cst_39 = arith.constant 9.99999968E-21 : f32
    %78 = vector.broadcast %cst_39 : f32 to vector<2x8x4xf32>
    %79 = arith.addf %77, %78 : vector<2x8x4xf32>
    %80 = math.log %79 : vector<2x8x4xf32>
    %81 = arith.subf %75, %80 : vector<2x8x4xf32>
    %82 = arith.addf %81, %3 : vector<2x8x4xf32>
    %cst_40 = arith.constant 1.000000e+00 : f32
    %83 = vector.broadcast %cst_40 : f32 to vector<2x8x4xf32>
    %84 = arith.mulf %82, %83 : vector<2x8x4xf32>
    %cst_41 = arith.constant 0.000000e+00 : f32
    %85 = vector.broadcast %cst_41 : f32 to vector<2x8x4xf32>
    %86 = arith.subf %85, %84 : vector<2x8x4xf32>
    %87 = math.exp %86 : vector<2x8x4xf32>
    %cst_42 = arith.constant 1.000000e+00 : f32
    %88 = vector.broadcast %cst_42 : f32 to vector<2x8x4xf32>
    %89 = arith.addf %88, %87 : vector<2x8x4xf32>
    %90 = tpu.reciprocal %89 {approx = true} : vector<2x8x4xf32> -> vector<2x8x4xf32>
    %91 = vector.shape_cast %90 : vector<2x8x4xf32> to vector<16x4xf32>
    %cst_43 = arith.constant dense<0.000000e+00> : vector<16x32xf32>
    %92 = tpu.matmul %91, %27, %cst_43 {dimension_numbers = #tpu.dot_dimension_numbers<[1], [0], [0], [1], [0, 0, 1, 1], [], []>} : vector<16x4xf32>, vector<4x32xf32>, vector<16x32xf32> -> vector<16x32xf32>
    %93 = vector.shape_cast %92 : vector<16x32xf32> to vector<2x8x32xf32>
    %94 = vector.shape_cast %42 : vector<16x32xf32> to vector<2x8x32xf32>
    %95 = arith.mulf %93, %94 : vector<2x8x32xf32>
    %cst_44 = arith.constant dense<0.000000e+00> : vector<2x32xf32>
    %96 = vector.multi_reduction <add>, %95, %cst_44 [1] : vector<2x8x32xf32> to vector<2x32xf32>
    %97 = arith.truncf %96 : vector<2x32xf32> to vector<2x32xbf16>
    %c0_45 = arith.constant 0 : index
    %c0_46 = arith.constant 0 : index
    %98 = vector.load %arg10[%c0_45, %c0_46] : memref<32x32xbf16, #tpu.memory_space<vmem>>, vector<32x32xbf16>
    %cst_47 = arith.constant dense<0.000000e+00> : vector<2x32xf32>
    %99 = tpu.matmul %97, %98, %cst_47 {dimension_numbers = #tpu.dot_dimension_numbers<[1], [0], [0], [1], [0, 0, 1, 1], [], []>} : vector<2x32xbf16>, vector<32x32xbf16>, vector<2x32xf32> -> vector<2x32xf32>
    %c0_48 = arith.constant 0 : index
    %c0_49 = arith.constant 0 : index
    %100 = vector.load %arg11[%c0_48, %c0_49] : memref<1x32xf32, #tpu.memory_space<vmem>>, vector<1x32xf32>
    %101 = vector.broadcast %100 : vector<1x32xf32> to vector<2x32xf32>
    %102 = arith.addf %99, %101 : vector<2x32xf32>
    %c0_50 = arith.constant 0 : index
    %c0_51 = arith.constant 0 : index
    %103 = vector.load %arg12[%c0_50, %c0_51] : memref<2x32xf32, #tpu.memory_space<vmem>>, vector<2x32xf32>
    tpu.vector_store %arg12[%c0_50, %c0_51], %102 {strides = array<i32>} : memref<2x32xf32, #tpu.memory_space<vmem>>, vector<2x32xf32>,
    return
  }
  func.func @transform_0(%arg0: i32) -> (i32, i32) {
    %c0_i32 = arith.constant 0 : i32
    %c0_i32_0 = arith.constant 0 : i32
    return %arg0, %c0_i32 : i32, i32
  }
  func.func @transform_1(%arg0: i32) -> (i32, i32, i32) {
    %c0_i32 = arith.constant 0 : i32
    %c0_i32_0 = arith.constant 0 : i32
    %c0_i32_1 = arith.constant 0 : i32
    return %arg0, %c0_i32, %c0_i32_0 : i32, i32, i32
  }
  func.func @transform_2(%arg0: i32) -> (i32, i32, i32) {
    %c0_i32 = arith.constant 0 : i32
    %c0_i32_0 = arith.constant 0 : i32
    %c0_i32_1 = arith.constant 0 : i32
    return %arg0, %c0_i32, %c0_i32_0 : i32, i32, i32
  }
  func.func @transform_3(%arg0: i32) -> (i32, i32) {
    %c0_i32 = arith.constant 0 : i32
    %c0_i32_0 = arith.constant 0 : i32
    %c0_i32_1 = arith.constant 0 : i32
    return %c0_i32, %c0_i32_0 : i32, i32
  }
  func.func @transform_4(%arg0: i32) -> (i32, i32) {
    %c0_i32 = arith.constant 0 : i32
    %c0_i32_0 = arith.constant 0 : i32
    %c0_i32_1 = arith.constant 0 : i32
    return %c0_i32, %c0_i32_0 : i32, i32
  }
  func.func @transform_5(%arg0: i32) -> (i32, i32) {
    %c0_i32 = arith.constant 0 : i32
    %c0_i32_0 = arith.constant 0 : i32
    %c0_i32_1 = arith.constant 0 : i32
    return %c0_i32, %c0_i32_0 : i32, i32
  }
  func.func @transform_6(%arg0: i32) -> (i32, i32) {
    %c0_i32 = arith.constant 0 : i32
    %c0_i32_0 = arith.constant 0 : i32
    %c0_i32_1 = arith.constant 0 : i32
    return %c0_i32, %c0_i32_0 : i32, i32
  }
  func.func @transform_7(%arg0: i32) -> (i32, i32) {
    %c0_i32 = arith.constant 0 : i32
    %c0_i32_0 = arith.constant 0 : i32
    %c0_i32_1 = arith.constant 0 : i32
    return %c0_i32, %c0_i32_0 : i32, i32
  }
  func.func @transform_8(%arg0: i32) -> (i32, i32) {
    %c0_i32 = arith.constant 0 : i32
    %c0_i32_0 = arith.constant 0 : i32
    %c0_i32_1 = arith.constant 0 : i32
    return %c0_i32, %c0_i32_0 : i32, i32
  }
  func.func @transform_9(%arg0: i32) -> (i32, i32) {
    %c0_i32 = arith.constant 0 : i32
    %c0_i32_0 = arith.constant 0 : i32
    %c0_i32_1 = arith.constant 0 : i32
    return %c0_i32, %c0_i32_0 : i32, i32
  }
  func.func @transform_10(%arg0: i32) -> (i32, i32) {
    %c0_i32 = arith.constant 0 : i32
    %c0_i32_0 = arith.constant 0 : i32
    %c0_i32_1 = arith.constant 0 : i32
    return %c0_i32, %c0_i32_0 : i32, i32
  }
  func.func @transform_11(%arg0: i32) -> (i32, i32) {
    %c0_i32 = arith.constant 0 : i32
    %c0_i32_0 = arith.constant 0 : i32
    return %arg0, %c0_i32 : i32, i32
  }
}

</mosaic_0001>

<bundles_post_ra>
// kernel: tpu_custom_call.1
= control target key start
LH: loop header
LB: loop body
LE: loop exit
PB: predicated region body
PF: predicated region fallthrough
CT: control target
= control target key end

     0   :  { %16 = vsyncpa [#allocation3], 0  ;;  %s1408_s0 = inlined_call_operand.vmem [shape: bf16[2,32], index: 0, kind: input, shape index: {}]   ;;  %s1409_s1 = inlined_call_operand.hbm [shape: bf16[2,8,32], index: 1, kind: input, shape index: {}]   ;;  %s1410_s2 = inlined_call_operand.vmem [shape: f32[2,8,4], index: 2, kind: input, shape index: {}]   ;;  %s1411_s3 = inlined_call_operand.vmem [shape: bf16[32,32], index: 3, kind: input, shape index: {}]   ;;  %s1412_s4 = inlined_call_operand.vmem [shape: f32[1,32], index: 4, kind: input, shape index: {}]   ;;  %s1413_s5 = inlined_call_operand.vmem [shape: bf16[32,32], index: 5, kind: input, shape index: {}]   ;;  %s1414_s6 = inlined_call_operand.hbm [shape: f32[1,32], index: 6, kind: input, shape index: {}]   ;;  %s1415_s7 = inlined_call_operand.vmem [shape: bf16[32,32], index: 7, kind: input, shape index: {}]   ;;  %s1416_s8 = inlined_call_operand.vmem [shape: f32[1,32], index: 8, kind: input, shape index: {}]   ;;  %s1417_s9 = inlined_call_operand.hbm [shape: bf16[32,32], index: 9, kind: input, shape index: {}]   ;;  %s1418_s10 = inlined_call_operand.vmem [shape: f32[1,32], index: 10, kind: input, shape index: {}]   ;;  %s1419_s11 = inlined_call_operand.hbm [shape: f32[2,32], index: 11, kind: output, shape index: {}]  }
   0x1   :  { %17 = vsyncpa [#allocation6], 0 }
   0x2   :  { %18 = vsyncpa [#allocation4], 0  ;;  %s1159_s17 = smov [#allocation5]   ;;  %s1160_s19 = smov [#allocation2]  }
   0x3   :  { %s47_s18 = sshll.u32 %s1159_s17, 4  ;;  %s26_s20 = sshll.u32 %s1160_s19, 4  ;;  %s48_s18 = int_to_ptr.vmem [resolvable:$true] %s47_s18  ;;  %s1230_s20 = int_to_ptr.vmem [resolvable:$true] %s26_s20 }
   0x4   :  { %s1065_s23 = scalar_lea.hbm %s1414_s6, 16 }
   0x5   :  { %p1066_p0 = scmp.ne.s32.totalorder %s1414_s6, %s1065_s23  ;;  %p1069_p1 = scmp.lt.u32.totalorder %s1065_s23, %s1414_s6 }
   0x7   :  { %p1071_p2 = pnand %p1069_p1, %p1066_p0 }
   0x9   :  { %1074 = shalt.err (!%p1071_p2)
}
   0xa   :  { %s1075_s28 = scalar_lea.vmem %s48_s18, 16  ;;  %s1079_s29 = scalar_lea.vmem %s48_s18, 32 }
   0xb   :  { %p1076_p3 = scmp.ne.s32.totalorder %s48_s18, %s1075_s28  ;;  %p1080_p4 = scmp.lt.s32.totalorder %s48_s18, %s48_s18 }
   0xc   :  { %p1081_p5 = scmp.lt.s32.totalorder %s1079_s29, %s1075_s28 }
   0xe   :  { %p1082_p6 = por %p1081_p5, %p1080_p4 }
  0x10   :  { %p1083_p7 = pnand %p1082_p6, %p1076_p3 }
  0x12   :  { %1086 = shalt.err (!%p1083_p7)
}
  0x13   :  { %50 = dma.hbm_to_vmem [thread:$0]  %s1414_s6, 16, %s48_s18, [#allocation6]  }
  0x14   :  { %s1087_s15 = scalar_lea.hbm %s1409_s1, 128 }
  0x15   :  { %p1088_p8 = scmp.ne.s32.totalorder %s1409_s1, %s1087_s15  ;;  %p1091_p9 = scmp.lt.u32.totalorder %s1087_s15, %s1409_s1 }
  0x17   :  { %p1093_p10 = pnand %p1091_p9, %p1088_p8 }
  0x19   :  { %1096 = shalt.err (!%p1093_p10)
}
  0x1a   :  { %s1097_s22 = scalar_lea.vmem %s1230_s20, 128  ;;  %p1102_p12 = scmp.lt.s32.totalorder %s1230_s20, %s1230_s20 }
  0x1b   :  { %p1098_p11 = scmp.ne.s32.totalorder %s1230_s20, %s1097_s22  ;;  %p1103_p13 = scmp.lt.s32.totalorder %s1097_s22, %s1097_s22 }
  0x1d   :  { %p1104_p0 = por %p1103_p13, %p1102_p12 }
  0x1f   :  { %p1105_p1 = pnand %p1104_p0, %p1098_p11 }
  0x21   :  { %1108 = shalt.err (!%p1105_p1)
}
  0x22   :  { %s1161_s6 = smov 64   ;;  %s1162_s18 = smov 4  }
  0x23   :  { %32 = dma.hbm_to_vmem [thread:$0]  %s1409_s1, 128, %s1230_s20, [#allocation3], %s1161_s6, %s1161_s6, %s1162_s18  }
  0x24   :  { %s1163_s25 = smov [#allocation7]   ;;  %s1109_s29 = scalar_lea.hbm %s1417_s9, 256 }
  0x25   :  { %s60_s26 = sshll.u32 %s1163_s25, 4  ;;  %p1110_p2 = scmp.ne.s32.totalorder %s1417_s9, %s1109_s29  ;;  %s61_s26 = int_to_ptr.vmem [resolvable:$true] %s60_s26 }
  0x26   :  { %p1113_p3 = scmp.lt.u32.totalorder %s1109_s29, %s1417_s9 }
  0x28   :  { %p1115_p4 = pnand %p1113_p3, %p1110_p2 }
  0x2a   :  { %1118 = shalt.err (!%p1115_p4)
}
  0x2b   :  { %s1119_s15 = scalar_lea.vmem %s61_s26, 256  ;;  %p1124_p6 = scmp.lt.s32.totalorder %s61_s26, %s61_s26 }
  0x2c   :  { %p1120_p5 = scmp.ne.s32.totalorder %s61_s26, %s1119_s15  ;;  %p1125_p7 = scmp.lt.s32.totalorder %s1119_s15, %s1119_s15 }
  0x2e   :  { %p1126_p8 = por %p1125_p7, %p1124_p6 }
  0x30   :  { %p1127_p9 = pnand %p1126_p8, %p1120_p5 }
  0x32   :  { %1130 = shalt.err (!%p1127_p9)
}
  0x33   :  { %66 = dma.hbm_to_vmem [thread:$0]  %s1417_s9, 256, %s61_s26, [#allocation6], %s1161_s6, %s1161_s6, %s1162_s18  }
  0x34   :  { %1153 = dma.done.wait [#allocation3], 128  }
  0x35   :  { %1154 = vsyncadd [#allocation3], 4294967168 }
  0x36   :  { %1155 = dma.done.wait [#allocation6], 272  }
  0x37   :  { %1156 = vsyncadd [#allocation6], 4294967024  ;;  %v1164_v0 = vmov 0.0   ;;  %v84_v1 = vlaneseq  ;;  %vm1165_vm0 = vmmov 0   ;;  %v1034_v5 = vld [vmem:[%s1411_s3] sm:$0xff]   ;;  %v1036_v9 = vld [vmem:[%s1411_s3 + $0x8] sm:$0xff]  }
  0x38   :  { %931 = vmatprep.subr.bf16.mxu0 %v1164_v0  ;;  %939 = vmatprep.subr.bf16.mxu1 %v1164_v0  ;;  %v1035_v7 = vld [vmem:[%s1413_s5] sm:$0xff]   ;;  %v1037_v10 = vld [vmem:[%s1413_s5 + $0x8] sm:$0xff]   ;;  %vm138_vm5 = vcmask 261120   ;;  %v1166_v14 = vmov 0.0|0.0   ;;  %v1167_v17 = vmov 1.0|1.0  }
  0x39   :  { %935 = vmatprep.mubr.msk.bf16.mxu0 %vm1165_vm0, %v1164_v0  ;;  %943 = vmatprep.mubr.msk.bf16.mxu1 %vm1165_vm0, %v1164_v0  ;;  %v1279_v2 = vand.u32 127, %v84_v1  ;;  %v1281_v3 = vshrl.u32 %v84_v1, 7  ;;  %v79_v11 = vld [vmem:[%s1408_s0] sm:$0x1]  ;;  %v1040_v16 = vld [vmem:[%s1415_s7 + $0x8] sm:$0xff]   ;;  %s1169_s13 = smov [#allocation8]  }
  0x3a   :  { %932 = vmatpush3.bf16.msra.mxu0 %v1034_v5  ;;  %940 = vmatpush3.bf16.msra.mxu1 %v1035_v7  ;;  %v1038_v12 = vld [vmem:[#allocation2] sm:$0xff]   ;;  %v1168_v21 = vmov 1966171168   ;;  %v866_v26 = vld [vmem:[#allocation5] ss:$0 sm:$0xff]  ;;  %s852_s14 = sshll.u32 %s1169_s13, 4  ;;  %s853_s14 = int_to_ptr.vmem [resolvable:$true] %s852_s14 }
  0x3b   :  { %v91_v4 = vmul.u32 8, %v1279_v2  ;;  %v86_v8 = vadd.s32 8, %v1281_v3  ;;  %933 = vmatprep.subr.bf16.mxu0 %v1164_v0  ;;  %941 = vmatprep.subr.bf16.mxu1 %v1164_v0  ;;  %v1039_v13 = vld [vmem:[%s1415_s7] sm:$0xff]   ;;  %v87_v18 = vadd.s32 16, %v1281_v3  ;;  %v88_v19 = vadd.s32 24, %v1281_v3  ;;  %s1131_s15 = scalar_lea.vmem %s853_s14, 32  ;;  %p1136_p11 = scmp.lt.s32.totalorder %s853_s14, %s853_s14 }
  0x3c   :  { %v480_v22 = vunpack.c.l.s4 %v1168_v21  ;;  %v862_v24 = vld [vmem:[%s1412_s4] ss:$0 sm:$0xff]  ;;  %v503_v36 = vsub.s32 0, %v1281_v3  ;;  %v109_v54 = vmul.u32 8, %v1281_v3  ;;  %p1132_p10 = scmp.ne.s32.totalorder %s853_s14, %s1131_s15  ;;  %p1137_p12 = scmp.lt.s32.totalorder %s1131_s15, %s1131_s15 }
  0x3d   :  { %v96_v6 = vadd.s32 8, %v91_v4  ;;  %vm92_vm1 = vcmp.ge.s32.totalorder %v1281_v3, %v91_v4  ;;  %vm93_vm3 = vcmp.ge.s32.totalorder %v86_v8, %v91_v4  ;;  %vm94_vm9 = vcmp.ge.s32.totalorder %v87_v18, %v91_v4 }
  0x3e   :  { %934 = vmatpush3.bf16.msra.mxu0 %v1036_v9  ;;  %942 = vmatpush3.bf16.msra.mxu1 %v1037_v10  ;;  %vm95_vm10 = vcmp.ge.s32.totalorder %v88_v19, %v91_v4  ;;  %v481_v23 = vunpack.c.0.s8 %v480_v22  ;;  %v111_v55 = vadd.s32 8, %v109_v54  ;;  %p1138_p13 = por %p1137_p12, %p1136_p11 }
  0x3f   :  { %vm97_vm2 = vcmp.lt.s32.totalorder %v1281_v3, %v96_v6  ;;  %vm98_vm4 = vcmp.lt.s32.totalorder %v86_v8, %v96_v6  ;;  %947 = vmatprep.subr.bf16.mxu0 %v1164_v0  ;;  %1001 = vmatprep.subr.bf16.mxu1 %v1166_v14  ;;  %vm99_vm11 = vcmp.lt.s32.totalorder %v87_v18, %v96_v6 }
  0x40   :  { %vm101_vm6 = vmand %vm92_vm1, %vm97_vm2  ;;  %vm100_vm12 = vcmp.lt.s32.totalorder %v88_v19, %v96_v6  ;;  %v1347_v25 = vsub.s32 %v481_v23, %v1281_v3  ;;  %vm110_vm1 = vcmp.ge.s32.totalorder %v1279_v2, %v109_v54  ;;  %vm112_vm2 = vcmp.lt.s32.totalorder %v1279_v2, %v111_v55  ;;  %p1139_p0 = pnand %p1138_p13, %p1132_p10 }
  0x41   :  { %vm102_vm7 = vmand %vm93_vm3, %vm98_vm4  ;;  %936 = vmatmul.mubr.msk.bf16.vlgmr.msra.gmra.mrb[0].mxu0 %vm138_vm5, %v79_v11  ;;  %944 = vmatmul.mubr.msk.bf16.vlgmr.msra.gmra.mrb[0].mxu1 %vm138_vm5, %v1038_v12  ;;  %vm674_vm3 = vcmask 1043456  }
  0x42   :  { %vm1309_vm8 = vmpackc.low %vm102_vm7, %vm101_vm6  ;;  %948 = vmatpush3.bf16.msra.mxu0 %v1039_v13  ;;  %951 = vmatprep.mubr.msk.bf16.mxu0 %vm1165_vm0, %v1164_v0  ;;  %vm786_vm6 = vcmask 1041409   ;;  %vm844_vm7 = vcmask 254976  }
  0x43   :  { %949 = vmatprep.subr.bf16.mxu0 %v1164_v0  ;;  %1003 = vmatpush3.bf16.msk.msra.mxu1 %vm1309_vm8, %v1167_v17  ;;  %vm103_vm13 = vmand %vm94_vm9, %vm99_vm11 }
  0x44   :  { %963 = vmatprep.mubr.msk.f32.mxu1 %vm1165_vm0, %v1164_v0  ;;  %1004 = vmatprep.subr.bf16.mxu1 %v1166_v14  ;;  %vm104_vm14 = vmand %vm95_vm10, %vm100_vm12 }
  0x45   :  { %vm1331_vm15 = vmpackc.low %vm104_vm14, %vm103_vm13 }
  0x46   :  { %950 = vmatpush3.bf16.msra.mxu0 %v1040_v16  ;;  %vm113_vm4 = vmand %vm110_vm1, %vm112_vm2 }
  0x47   :  { %1008 = vmatprep.subr.msk.bf16.mxu0 %vm1309_vm8, %v1167_v17  ;;  %1006 = vmatpush3.bf16.msk.msra.mxu1 %vm1331_vm15, %v1167_v17  ;;  %v114_v56 = vsel %vm113_vm4, 1.0, %v1164_v0 }
  0x48   :  { %1016 = vmatprep.subr.msk.bf16.mxu1 %vm1309_vm8, %v1167_v17 }
  0x49   :  { %952 = vmatmul.mubr.msk.bf16.vlgmr.msra.gmra.mrb[4].mxu0 %vm138_vm5, %v1038_v12 }
  0x4a   :  { %1010 = vmatpush3.bf16.msk.msra.mxu0 %vm1309_vm8, %v1167_v17 }
  0x4b   :  { %1012 = vmatprep.subr.msk.bf16.mxu0 %vm1331_vm15, %v1167_v17 }
  0x4e   :  { %1014 = vmatpush3.bf16.msk.msra.mxu0 %vm1331_vm15, %v1167_v17 }
  0x4f   :  { %988 = vmatprep.subr.msk.mxu0 %vm674_vm3, %v114_v56 }
 0x114   :  { %v176_v27 = vpop.f32.mrb[0].mxu0  ;;  %v247_v29 = vpop.f32.mrb[0].mxu1 }
 0x115   :  { %v177_v28 = vadd.f32 %v862_v24, %v176_v27  ;;  %v937_v30 = vpop.f32.mrb[1].mxu0  ;;  %v248_v31 = vadd.f32 %v866_v26, %v247_v29  ;;  %v945_v32 = vpop.f32.mrb[1].mxu1 }
 0x116   :  { %v179_v33 = vpop.f32.mrb[2].mxu0  ;;  %v250_v37 = vpop.f32.mrb[2].mxu1 }
 0x117   :  { %v318_v34 = vmul.f32 %v177_v28, %v177_v28  ;;  %v485_v35 = vrot.slane %v177_v28, %v1347_v25  ;;  %v938_v38 = vpop.f32.mrb[3].mxu0  ;;  %v393_v39 = vmul.f32 %v248_v31, %v248_v31  ;;  %v251_v40 = vadd.f32 %v866_v26, %v250_v37  ;;  %v946_v41 = vpop.f32.mrb[3].mxu1 }
 0x118   :  { %v82_v38 = vld [vmem:[%s1410_s2] sm:$0xff] }
 0x119   :  { %v486_v42 = vcombine.high %v485_v35, %v485_v35  ;;  %v493_v43 = vrot.slane %v485_v35, %v1347_v25  ;;  %964 = vmatmul.mubr.msk.f32.vlgmr.msra.gmra.mrb[4].mxu1 %vm138_vm5, %v318_v34  ;;  %v394_v44 = vmul.f32 %v251_v40, %v251_v40  ;;  %974 = vmatprep.mubr.msk.f32.mxu0 %vm138_vm5, %v393_v39  ;;  %v83_v39 = vld [vmem:[%s1410_s2 + $0x8] sm:$0xff] }
 0x11a   :  { %1018 = vmatpush3.bf16.msk.msra.mxu1 %vm1309_vm8, %v1167_v17 }
 0x11b   :  { %v504_v45 = vrot.slane %v493_v43, %v503_v36  ;;  %v500_v46 = vrot.slane %v486_v42, %v1347_v25  ;;  %1020 = vmatprep.subr.msk.bf16.mxu1 %vm1331_vm15, %v1167_v17  ;;  %975 = vmatmul.mubr.msk.f32.vlgmr.msra.gmra.mrb[8].mxu0 %vm138_vm5, %v394_v44 }
 0x11c   :  { %v1360_v47 = vpop.f32.mrb[4].mxu0  ;;  %989 = vmatpush3.msk.msra.mxu0 %vm674_vm3, %v114_v56  ;;  %v1041_v56 = vld [vmem:[#allocation7] sm:$0xff]  }
 0x11d   :  { %v511_v48 = vmul.f32 %v504_v45, %v248_v31  ;;  %v508_v49 = vrot.slane %v500_v46, %v503_v36  ;;  %v953_v50 = vpop.f32.mrb[5].mxu0 }
 0x11e   :  { %1022 = vmatpush3.bf16.msk.msra.mxu1 %vm1331_vm15, %v1167_v17  ;;  %v1364_v51 = vpop.f32.mrb[6].mxu0 }
 0x11f   :  { %v512_v52 = vmul.f32 %v508_v49, %v251_v40  ;;  %985 = vmatprep.mubr.msk.f32.mxu1 %vm138_vm5, %v511_v48  ;;  %v954_v53 = vpop.f32.mrb[7].mxu0  ;;  %993 = vmatprep.subr.bf16.mxu1 %v1164_v0 }
 0x121   :  { %986 = vmatmul.mubr.msk.f32.vlgmr.msra.gmra.mrb[6].mxu1 %vm138_vm5, %v512_v52 }
 0x122   :  { %997 = vmatprep.mubr.msk.bf16.mxu1 %vm1165_vm0, %v1164_v0  ;;  %vm667_vm0 = vcmask 31744   ;;  %994 = vmatpush3.bf16.msra.mxu1 %v1041_v56 }
 0x123   :  { %995 = vmatprep.subr.bf16.mxu1 %v1164_v0 }
 0x1ec   :  { %v388_v57 = vpop.f32.mrb[4].mxu1 }
 0x1ed   :  { %v389_v58 = vadd.f32 1e-12, %v388_v57  ;;  %v965_v59 = vpop.f32.mrb[5].mxu1  ;;  %v1042_v57 = vld [vmem:[#allocation7 + $0x8] sm:$0xff]  }
 0x1ee   :  { %v976_v60 = vpop.f32.mrb[8].mxu0  ;;  %996 = vmatpush3.bf16.msra.mxu1 %v1042_v57 }
 0x1ef   :  { %1043 = vrsqrt.f32 %v389_v58  ;;  %v473_v61 = vadd.f32 1e-12, %v976_v60  ;;  %v467_v62 = vpop.f32.mrb[9].mxu0  ;;  %v871_v58 = vld [vmem:[%s1416_s8] ss:$0 sm:$0xff] }
 0x1f0   :  { %v468_v63 = vadd.f32 1e-12, %v467_v62  ;;  %v315_v59 = vadd.f32 %v871_v58, %v1364_v51  ;;  %v312_v60 = vadd.f32 %v871_v58, %v1360_v47 }
 0x1f1   :  { %1045 = vrsqrt.f32 %v473_v61 }
 0x1f2   :  { %1047 = vrsqrt.f32 %v468_v63 }
 0x1f4   :  { %v987_v1 = vpop.f32.mrb[6].mxu1 }
 0x1f5   :  { %v585_v3 = vpop.f32.mrb[7].mxu1 }
 0x1f9   :  { %v1044_v4 = vpop.eup %1043 }
 0x1fa   :  { %v603_v2 = vrot.slane %v1044_v4, %v1347_v25 }
 0x1fb   :  { %v1046_v5 = vpop.eup %1045 }
 0x1fc   :  { %v604_v6 = vcombine.high %v603_v2, %v603_v2  ;;  %v611_v7 = vrot.slane %v603_v2, %v1347_v25  ;;  %v1048_v8 = vpop.eup %1047  ;;  %v595_v9 = vmul.f32 %v1046_v5, %v987_v1 }
 0x1fd   :  { %v594_v11 = vmul.f32 %v1048_v8, %v585_v3 }
 0x1fe   :  { %v618_v10 = vrot.slane %v604_v6, %v1347_v25  ;;  %v622_v12 = vrot.slane %v611_v7, %v503_v36 }
 0x200   :  { %v626_v13 = vrot.slane %v618_v10, %v503_v36  ;;  %v629_v14 = vmul.f32 %v622_v12, %v594_v11 }
 0x202   :  { %v630_v15 = vmul.f32 %v626_v13, %v595_v9  ;;  %v631_v16 = vadd.f32 1.0, %v629_v14 }
 0x204   :  { %v632_v17 = vadd.f32 1.0, %v630_v15  ;;  %v633_v18 = vmul.f32 0.5, %v631_v16 }
 0x206   :  { %v634_v19 = vmul.f32 0.5, %v632_v17  ;;  %v635_v20 = vmax.f32 %v633_v18, 0.0 }
 0x208   :  { %v636_v21 = vmax.f32 %v634_v19, 0.0  ;;  %v637_v22 = vmin.f32 %v635_v20, 1.0  ;;  %v895_v19 = vld [vmem:[%s1418_s10] ss:$0 sm:$0xff] }
 0x20a   :  { %v638_v23 = vmin.f32 %v636_v21, 1.0  ;;  %v639_v24 = vadd.f32 1e-20, %v637_v22  ;;  %v645_v26 = vsub.f32 1.0, %v637_v22 }
 0x20c   :  { %v640_v27 = vadd.f32 1e-20, %v638_v23  ;;  %v646_v28 = vsub.f32 1.0, %v638_v23  ;;  %v647_v29 = vadd.f32 1e-20, %v645_v26  ;;  %1049 = vlog2.f32 %v639_v24 }
 0x20e   :  { %1051 = vlog2.f32 %v640_v27  ;;  %v648_v25 = vadd.f32 1e-20, %v646_v28 }
 0x20f   :  { %1053 = vlog2.f32 %v647_v29 }
 0x210   :  { %1055 = vlog2.f32 %v648_v25 }
 0x216   :  { %v1050_v30 = vpop.eup %1049 }
 0x217   :  { %v642_v34 = vmul.f32 0.6931472, %v1050_v30 }
 0x218   :  { %v1052_v31 = vpop.eup %1051 }
 0x219   :  { %v1054_v32 = vpop.eup %1053  ;;  %v644_v36 = vmul.f32 0.6931472, %v1052_v31 }
 0x21a   :  { %v1056_v33 = vpop.eup %1055  ;;  %v650_v35 = vmul.f32 0.6931472, %v1054_v32 }
 0x21b   :  { %v652_v37 = vmul.f32 0.6931472, %v1056_v33 }
 0x21c   :  { %v653_v40 = vsub.f32 %v642_v34, %v650_v35 }
 0x21d   :  { %v654_v41 = vsub.f32 %v644_v36, %v652_v37 }
 0x21e   :  { %v655_v42 = vadd.f32 %v653_v40, %v82_v38 }
 0x21f   :  { %v656_v43 = vadd.f32 %v654_v41, %v83_v39 }
 0x220   :  { %v657_v44 = vsub.f32 0.0, %v655_v42 }
 0x221   :  { %v658_v45 = vsub.f32 0.0, %v656_v43 }
 0x222   :  { %v659_v46 = vmul.f32 1.442695, %v657_v44 }
 0x223   :  { %v661_v48 = vmul.f32 1.442695, %v658_v45 }
 0x224   :  { %1057 = vpow2.f32 %v659_v46 }
 0x225   :  { %1059 = vpow2.f32 %v661_v48 }
 0x22e   :  { %v1058_v49 = vpop.eup %1057 }
 0x22f   :  { %v1060_v50 = vpop.eup %1059  ;;  %v663_v52 = vadd.f32 1.0, %v1058_v49 }
 0x230   :  { %v664_v53 = vadd.f32 1.0, %v1060_v50 }
 0x231   :  { %1061 = vrcp.f32 %v663_v52 }
 0x232   :  { %1063 = vrcp.f32 %v664_v53 }
 0x23b   :  { %v1062_v54 = vpop.eup %1061 }
 0x23c   :  { %v1064_v55 = vpop.eup %1063  ;;  %990 = vmatprep.mubr.msk.f32.mxu0 %vm667_vm0, %v1062_v54 }
 0x23d   :  { %991 = vmatmul.mubr.msk.f32.vlgmr.msra.gmra.mrb[10].mxu0 %vm667_vm0, %v1064_v55 }
 0x310   :  { %v992_v61 = vpop.f32.mrb[10].mxu0 }
 0x311   :  { %v754_v62 = vmul.f32 %v992_v61, %v315_v59  ;;  %v744_v63 = vpop.f32.mrb[11].mxu0 }
 0x312   :  { %v753_v1 = vmul.f32 %v744_v63, %v312_v60 }
 0x313   :  { %v762_v3 = vsel %vm138_vm5, %v754_v62, 0.0 }
 0x314   :  { %v763_v4 = vrot.slane %v762_v3, 4  ;;  %v755_v2 = vsel %vm138_vm5, %v753_v1, 0.0 }
 0x315   :  { %v756_v0 = vrot.slane %v755_v2, 4 }
 0x316   :  { %v764_v5 = vadd.f32 %v763_v4, %v762_v3 }
 0x317   :  { %v757_v6 = vadd.f32 %v756_v0, %v755_v2 }
 0x318   :  { %v765_v7 = vrot.slane %v764_v5, 2 }
 0x319   :  { %v758_v8 = vrot.slane %v757_v6, 2 }
 0x31a   :  { %v766_v9 = vadd.f32 %v765_v7, %v764_v5 }
 0x31b   :  { %v759_v10 = vadd.f32 %v758_v8, %v757_v6 }
 0x31c   :  { %v767_v11 = vrot.slane %v766_v9, 1 }
 0x31d   :  { %v760_v51 = vrot.slane %v759_v10, 1 }
 0x31e   :  { %v768_v12 = vadd.f32 %v767_v11, %v766_v9 }
 0x31f   :  { %v761_v47 = vadd.f32 %v760_v51, %v759_v10 }
 0x320   :  { %v770_v13 = vpack.c.bf16 %v768_v12, %v768_v12 }
 0x321   :  { %v769_v14 = vpack.c.bf16 %v761_v47, %v761_v47 }
 0x322   :  { %v785_v15 = vunpack.c.l.b16 %v770_v13 }
 0x323   :  { %v784_v16 = vunpack.c.l.b16 %v769_v14 }
 0x325   :  { %v787_v17 = vsel %vm786_vm6, %v785_v15, %v784_v16 }
 0x326   :  { %v788_v18 = vpack.c.b16 %v787_v17, %v787_v17 }
 0x328   :  { %998 = vmatmul.mubr.msk.bf16.vlgmr.msra.gmra.mrb[8].mxu1 %vm138_vm5, %v788_v18 }
 0x3fb   :  { %v838_v20 = vpop.f32.mrb[8].mxu1 }
 0x3fc   :  { %v839_v21 = vadd.f32 %v895_v19, %v838_v20  ;;  %v999_v22 = vpop.f32.mrb[9].mxu1 }
 0x3fd   :  { %v841_v23 = vpop.f32.mrb[10].mxu1 }
 0x3fe   :  { %v1000_v24 = vpop.f32.mrb[11].mxu1  ;;  %845 = vst.msk [vmem:[#allocation8] sm:$0x3] %vm844_vm7, %v839_v21 }
 0x3ff   :  { %1142 = shalt.err (!%p1139_p0)
}
 0x400   :  { %s1143_s10 = scalar_lea.hbm %s1419_s11, 32 }
 0x401   :  { %p1144_p1 = scmp.ne.s32.totalorder %s1419_s11, %s1143_s10  ;;  %p1147_p2 = scmp.lt.u32.totalorder %s1143_s10, %s1419_s11 }
 0x403   :  { %p1149_p3 = pnand %p1147_p2, %p1144_p1 }
 0x405   :  { %1152 = shalt.err (!%p1149_p3)
}
 0x406   :  { %855 = dma.vmem_to_hbm [thread:$0]  %s853_s14, 32, %s1419_s11, [#allocation4]  }
 0x407   :  { %1157 = dma.done.wait [#allocation4], 32  }
 0x408   :  { %1158 = vsyncadd [#allocation4], 4294967264 }
 0x409   :  { %859 = vsyncpa [#allocation3], 1 }
 0x40a   :  { %860 = vsyncpa [#allocation6], 1 }
 0x40b   :  { %861 = vsyncpa [#allocation4], 1 }

</bundles_post_ra>
